<compile_context>
chip_gen: v5e
topology: v5e:2x2
jax: 0.10.0
libtpu: 0.0.40
codegen_flags: <defaults>
</compile_context>

<pallas_src>
import functools

import numpy as np
import jax
import jax.numpy as jnp
from jax.experimental import pallas as pl
from jax.experimental.pallas import tpu as pltpu


def _fourier_kernel(x_ref, scale_ref, phase_ref, o_ref, *,
                    input_dim: int, num_freqs: int):
    # x_ref:     (D, block_n)        rows-on-lanes input tile
    # scale_ref: (out_dim, 1)        per-output-row frequency (0 for the raw-x rows)
    # phase_ref: (out_dim, 1)        0 for sin rows, pi/2 for cos rows
    # o_ref:     (out_dim, block_n)  output tile, features on sublanes
    D, F = input_dim, num_freqs
    bn = x_ref.shape[1]
    x = x_ref[...].astype(jnp.float32)                              # (D, bn)

    # Build the (out_dim, bn) slab [x-dummy ; x_d repeated F times (sin half) ;
    # same (cos half)] with sublane broadcasts + one concat, then do ONE fused
    # transcendental pass: cos(t) == sin(t + pi/2), so a single jnp.sin covers
    # both halves (review items 1 & 3).
    rep = [jnp.broadcast_to(x[d:d + 1, :], (F, bn)) for d in range(D)]
    slab = jnp.concatenate([x] + rep + rep, axis=0)                 # (out_dim, bn)
    arg = slab * scale_ref[...] + phase_ref[...]                    # rows 0..D-1 -> 0
    o_ref[...] = jnp.sin(arg).astype(o_ref.dtype)                   # full, unmasked store
    o_ref[0:D, :] = x.astype(o_ref.dtype)                           # raw x in first D rows


class FourierEmbedder:
    """Pallas-backed equivalent of the PyTorch FourierEmbedder module."""

    _LANE = 128                # row axis lives on the 128-lane axis
    _DEFAULT_BLOCK_COLS = 4096  # rows per grid step (multiple of 128)

    def __init__(self, num_freqs: int = 6, input_dim: int = 3,
                 block_cols: int = _DEFAULT_BLOCK_COLS):
        self.num_freqs = num_freqs
        self.input_dim = input_dim
        self.out_dim = input_dim * (num_freqs * 2 + 1)
        self.block_cols = block_cols

        # Per-output-row scale / phase, passed as kernel operands (Pallas
        # rejects captured non-scalar array constants inside the kernel body).
        D, F = input_dim, num_freqs
        freqs = 2.0 ** np.arange(F, dtype=np.float32)
        scale = np.zeros((self.out_dim, 1), np.float32)
        phase = np.zeros((self.out_dim, 1), np.float32)
        scale[D:D + D * F, 0] = np.tile(freqs, D)          # sin rows: x_d * 2^f
        scale[D + D * F:, 0] = np.tile(freqs, D)           # cos rows: x_d * 2^f
        phase[D + D * F:, 0] = np.float32(np.pi / 2.0)     # cos(t) = sin(t + pi/2)
        self._scale = jnp.asarray(scale)
        self._phase = jnp.asarray(phase)

    def __call__(self, x: jnp.ndarray) -> jnp.ndarray:
        lead_shape = x.shape[:-1]
        D = x.shape[-1]
        assert D == self.input_dim, f"expected last dim {self.input_dim}, got {D}"
        out_dim = self.out_dim

        x2d = x.reshape(-1, D)
        N = x2d.shape[0]
        xt = x2d.T                                   # (D, N): rows on lanes (cheap, 12 B/row)

        lane = self._LANE
        n_pad = max(lane, -(-N // lane) * lane)      # pad rows only to a lane multiple
        if n_pad != N:
            xt = jnp.pad(xt, ((0, 0), (0, n_pad - N)))   # padded cols -> sin(0)/cos(0), dropped

        block_n = min(self.block_cols, n_pad)
        block_n = max(lane, (block_n // lane) * lane)    # keep a multiple of 128
        # v7x megacore: keep the parallel grid axis at >= 2 steps when possible.
        if n_pad >= 2 * lane and block_n >= n_pad:
            block_n = -(-(n_pad // 2) // lane) * lane
        grid = (pl.cdiv(n_pad, block_n),)            # ragged final block handled by Pallas

        kernel = functools.partial(_fourier_kernel, input_dim=D,
                                   num_freqs=self.num_freqs)

        out_t = pl.pallas_call(
            kernel,
            out_shape=jax.ShapeDtypeStruct((out_dim, n_pad), x.dtype),
            grid_spec=pltpu.PrefetchScalarGridSpec(
                num_scalar_prefetch=0,
                grid=grid,
                in_specs=[
                    pl.BlockSpec((D, block_n), lambda i: (0, i)),
                    pl.BlockSpec((out_dim, 1), lambda i: (0, 0)),
                    pl.BlockSpec((out_dim, 1), lambda i: (0, 0)),
                ],
                out_specs=pl.BlockSpec((out_dim, block_n), lambda i: (0, i)),
            ),
            compiler_params=pltpu.CompilerParams(
                dimension_semantics=("parallel",),
            ),
        )(xt, self._scale, self._phase)

        # One XLA transpose back to row-major; the [:N] slice fuses into it.
        out2d = out_t[:, :N].T
        return out2d.reshape(*lead_shape, out_dim)


def _reference(x, num_freqs):
    freq = 2.0 ** jnp.arange(num_freqs, dtype=jnp.float32)
    embed = (x.astype(jnp.float32)[..., None] * freq).reshape(*x.shape[:-1], -1)
    return jnp.concatenate(
        [x.astype(jnp.float32), jnp.sin(embed), jnp.cos(embed)], axis=-1
    ).astype(x.dtype)


if __name__ == "__main__":
    num_freqs, input_dim = 6, 3
    emb = FourierEmbedder(num_freqs=num_freqs, input_dim=input_dim)

    # small shape consistent with the module: (batch=2, seq=8, input_dim=3)
    key = jax.random.PRNGKey(0)
    x = jax.random.normal(key, (2, 8, input_dim), dtype=jnp.float32)
    out = jax.block_until_ready(emb(x))
    assert out.shape == (2, 8, emb.out_dim), out.shape
    ref = _reference(x, num_freqs)
    # atol 2e-5: the fused cos = sin(t + pi/2) introduces ~1e-6-level deviation
    # for the largest frequency; still tight enough to catch real bugs.
    assert jnp.allclose(out, ref, atol=2e-5, rtol=1e-5), "mismatch vs reference"

    # non-lane-aligned row count (N = 35) exercises the padded-column path
    x2 = jax.random.normal(jax.random.PRNGKey(1), (5, 7, input_dim), dtype=jnp.float32)
    out2 = jax.block_until_ready(emb(x2))
    ref2 = _reference(x2, num_freqs)
    assert out2.shape == ref2.shape, out2.shape
    assert jnp.allclose(out2, ref2, atol=2e-5, rtol=1e-5), "mismatch (padded)"

    # N = 640 exercises the multi-step grid with a ragged final block
    x3 = jax.random.normal(jax.random.PRNGKey(2), (4, 160, input_dim), dtype=jnp.float32)
    out3 = jax.block_until_ready(emb(x3))
    ref3 = _reference(x3, num_freqs)
    assert out3.shape == ref3.shape, out3.shape
    assert jnp.allclose(out3, ref3, atol=2e-5, rtol=1e-5), "mismatch (multi-block)"

    print("KERNEL_OK")
</pallas_src>

<mosaic_0001>
module attributes {stable_mosaic.version = 11 : i64} {
  func.func @_fourier_kernel(%arg0: i32, %arg1: memref<3x128xf32, #tpu.memory_space<vmem>>, %arg2: memref<39x1xf32, #tpu.memory_space<vmem>>, %arg3: memref<39x1xf32, #tpu.memory_space<vmem>>, %arg4: memref<39x128xf32, #tpu.memory_space<vmem>>) attributes {dimension_semantics = [#tpu.dimension_semantics<parallel>], iteration_bounds = array<i64: 1>, scalar_prefetch = 0 : i64, scratch_operands = 0 : i64, tpu.core_type = #tpu.core_type<tc>, window_params = [{transform_indices = @transform_0, window_bounds = array<i64: 3, 128>}, {pipeline_mode = #tpu.pipeline_mode<synchronous>, transform_indices = @transform_1, window_bounds = array<i64: 39, 1>}, {pipeline_mode = #tpu.pipeline_mode<synchronous>, transform_indices = @transform_2, window_bounds = array<i64: 39, 1>}, {transform_indices = @transform_3, window_bounds = array<i64: 39, 128>}]} {
    %c0 = arith.constant 0 : index
    %c0_0 = arith.constant 0 : index
    %0 = vector.load %arg1[%c0, %c0_0] : memref<3x128xf32, #tpu.memory_space<vmem>>, vector<3x128xf32>
    %1 = vector.extract_strided_slice %0 {offsets = [0, 0], sizes = [1, 128], strides = [1, 1]} : vector<3x128xf32> to vector<1x128xf32>
    %2 = vector.shape_cast %1 : vector<1x128xf32> to vector<1x128xf32>
    %3 = vector.broadcast %2 : vector<1x128xf32> to vector<6x128xf32>
    %4 = vector.extract_strided_slice %0 {offsets = [1, 0], sizes = [1, 128], strides = [1, 1]} : vector<3x128xf32> to vector<1x128xf32>
    %5 = vector.shape_cast %4 : vector<1x128xf32> to vector<1x128xf32>
    %6 = vector.broadcast %5 : vector<1x128xf32> to vector<6x128xf32>
    %7 = vector.extract_strided_slice %0 {offsets = [2, 0], sizes = [1, 128], strides = [1, 1]} : vector<3x128xf32> to vector<1x128xf32>
    %8 = vector.shape_cast %7 : vector<1x128xf32> to vector<1x128xf32>
    %9 = vector.broadcast %8 : vector<1x128xf32> to vector<6x128xf32>
    %10 = tpu.concatenate %0, %3, %6, %9, %3, %6, %9 in 0 : vector<3x128xf32>, vector<6x128xf32>, vector<6x128xf32>, vector<6x128xf32>, vector<6x128xf32>, vector<6x128xf32>, vector<6x128xf32> -> vector<39x128xf32>
    %c0_1 = arith.constant 0 : index
    %c0_2 = arith.constant 0 : index
    %11 = vector.load %arg2[%c0_1, %c0_2] : memref<39x1xf32, #tpu.memory_space<vmem>>, vector<39x1xf32>
    %12 = vector.broadcast %11 : vector<39x1xf32> to vector<39x128xf32>
    %13 = arith.mulf %10, %12 : vector<39x128xf32>
    %c0_3 = arith.constant 0 : index
    %c0_4 = arith.constant 0 : index
    %14 = vector.load %arg3[%c0_3, %c0_4] : memref<39x1xf32, #tpu.memory_space<vmem>>, vector<39x1xf32>
    %15 = vector.broadcast %14 : vector<39x1xf32> to vector<39x128xf32>
    %16 = arith.addf %13, %15 : vector<39x128xf32>
    %17 = math.sin %16 : vector<39x128xf32>
    %c0_5 = arith.constant 0 : index
    %c0_6 = arith.constant 0 : index
    %18 = vector.load %arg4[%c0_5, %c0_6] : memref<39x128xf32, #tpu.memory_space<vmem>>, vector<39x128xf32>
    tpu.vector_store %arg4[%c0_5, %c0_6], %17 {strides = array<i32>} : memref<39x128xf32, #tpu.memory_space<vmem>>, vector<39x128xf32>,
    %c0_7 = arith.constant 0 : index
    %c0_8 = arith.constant 0 : index
    %19 = vector.load %arg4[%c0_7, %c0_8] : memref<39x128xf32, #tpu.memory_space<vmem>>, vector<3x128xf32>
    tpu.vector_store %arg4[%c0_7, %c0_8], %0 {strides = array<i32>} : memref<39x128xf32, #tpu.memory_space<vmem>>, vector<3x128xf32>,
    return
  }
  func.func @transform_0(%arg0: i32) -> (i32, i32) {
    %c0_i32 = arith.constant 0 : i32
    %c0_i32_0 = arith.constant 0 : i32
    return %c0_i32, %arg0 : i32, i32
  }
  func.func @transform_1(%arg0: i32) -> (i32, i32) {
    %c0_i32 = arith.constant 0 : i32
    %c0_i32_0 = arith.constant 0 : i32
    %c0_i32_1 = arith.constant 0 : i32
    return %c0_i32, %c0_i32_0 : i32, i32
  }
  func.func @transform_2(%arg0: i32) -> (i32, i32) {
    %c0_i32 = arith.constant 0 : i32
    %c0_i32_0 = arith.constant 0 : i32
    %c0_i32_1 = arith.constant 0 : i32
    return %c0_i32, %c0_i32_0 : i32, i32
  }
  func.func @transform_3(%arg0: i32) -> (i32, i32) {
    %c0_i32 = arith.constant 0 : i32
    %c0_i32_0 = arith.constant 0 : i32
    return %c0_i32, %arg0 : i32, i32
  }
}

</mosaic_0001>

<bundles_post_ra>
// kernel: tpu_custom_call.1
= control target key start
LH: loop header
LB: loop body
LE: loop exit
PB: predicated region body
PF: predicated region fallthrough
CT: control target
= control target key end

     0   :  { %v952_v2 = vmov 0   ;;  %s1531_s0 = inlined_call_operand.vmem [shape: f32[3,128], index: 0, kind: input, shape index: {}]   ;;  %s1532_s1 = inlined_call_operand.vmem [shape: f32[39,1], index: 1, kind: input, shape index: {}]   ;;  %s1533_s2 = inlined_call_operand.vmem [shape: f32[39,1], index: 2, kind: input, shape index: {}]   ;;  %s1534_s3 = inlined_call_operand.hbm [shape: f32[39,128], index: 3, kind: output, shape index: {}]  }
   0x1   :  { %v31_v0 = vld [vmem:[%s1532_s1 + $0x10] sm:$0xff]  ;;  %v29_v1 = vld [vmem:[%s1532_s1] sm:$0xff]  ;;  %924 = vset.pattern.permute.xlu1 %v952_v2  ;;  %923 = vset.pattern.permute.xlu0 %v952_v2 }
   0x2   :  { %v33_v3 = vld [vmem:[%s1532_s1 + $0x20] sm:$0x7f]  ;;  %46 = vperm.xlu1 %924, %v31_v0   ;;  %36 = vperm.xlu0 %923, %v29_v1  }
   0x3   :  { %925 = vset.pattern.permute.xlu2 %v952_v2 }
   0x4   :  { %8 = vsyncpa [#allocation3], 0  ;;  %56 = vperm.xlu2 %925, %v33_v3   ;;  %v32_v4 = vld [vmem:[%s1532_s1 + $0x18] sm:$0xff]  ;;  %v30_v5 = vld [vmem:[%s1532_s1 + $0x8] sm:$0xff]  ;;  %vm21_vm0 = vcmask 1040384   ;;  %vm19_vm1 = vcmask 1042432  }
   0x5   :  { %v64_v6 = vld [vmem:[%s1533_s2] sm:$0xff]  ;;  %v66_v7 = vld [vmem:[%s1533_s2 + $0x10] sm:$0xff]  ;;  %v65_v8 = vld [vmem:[%s1533_s2 + $0x8] sm:$0xff]  ;;  %vm25_vm2 = vcmask 1044480   ;;  %v953_v48 = vmov 683565275  }
   0x6   :  { %v67_v9 = vld [vmem:[%s1533_s2 + $0x18] sm:$0xff]  ;;  %v68_v10 = vld [vmem:[%s1533_s2 + $0x20] sm:$0x7f]  ;;  %v954_v50 = vmov 2475754826   ;;  %s886_s8 = sshll.u32 %s1534_s3, 4  ;;  %s887_s8 = int_to_ptr.hbm [resolvable:$true] %s886_s8 }
   0x7   :  { %v1018_v11 = vld [vmem:[%s1531_s0] sm:$0x7]  ;;  %v955_v54 = vmov 2131351028   ;;  %v956_v57 = vmov 2102212464  }
   0x8   :  { %v17_v12 = vperm.slane %v1018_v11, 1  ;;  %v1022_v13 = vperm.slane %v1018_v11, 2  ;;  %v16_v17 = vperm.slane %v1018_v11, 0  ;;  %v957_v60 = vmov 920167782   ;;  %s959_s0 = smov [#allocation2]  }
   0x9   :  { %v958_v63 = vmov 1326507024   ;;  %s884_s2 = sshll.u32 %s959_s0, 4  ;;  %s960_s9 = smov 128   ;;  %s885_s2 = int_to_ptr.vmem [resolvable:$true] %s884_s2 }
   0xa   :  { %51 = vperm.xlu1 %924, %v32_v4   ;;  %41 = vperm.xlu0 %923, %v30_v5   ;;  %v28_v14 = vsel %vm21_vm0, %v17_v12, %v1022_v13  ;;  %v1028_v18 = vsel %vm21_vm0, %v16_v17, %v17_v12  ;;  %v20_v19 = vsel %vm19_vm1, %v1018_v11, %v16_v17  ;;  %s961_s10 = smov 8  }
   0xb   :  { %v27_v27 = vsel %vm19_vm1, %v16_v17, %v17_v12  ;;  %v26_v42 = vsel %vm25_vm2, %v1022_v13, %v16_v17 }
   0xc   :  { %71 = vperm.xlu2 %925, %v64_v6  }
  0x12   :  { %81 = vperm.xlu1 %924, %v66_v7   ;;  %76 = vperm.xlu0 %923, %v65_v8  }
  0x14   :  { %86 = vperm.xlu2 %925, %v67_v9  }
  0x1a   :  { %91 = vperm.xlu0 %923, %v68_v10  }
  0x5e   :  { %v57_v15 = vpop.permute.xlu2 %56 }
  0x5f   :  { %v1025_v16 = vmul.f32 %v57_v15, %v28_v14 }
  0x66   :  { %v72_v20 = vpop.permute.xlu2 %71 }
  0x6e   :  { %v87_v34 = vpop.permute.xlu2 %86 }
  0x74   :  { %v1031_v21 = vpop.permute.xlu1 %46  ;;  %v37_v22 = vpop.permute.xlu0 %36 }
  0x75   :  { %v59_v23 = vmul.f32 %v37_v22, %v20_v19 }
  0x77   :  { %v1033_v24 = vadd.f32 %v72_v20, %v59_v23 }
  0x79   :  { %v99_v25 = vand.u32 2147483647, %v1033_v24  ;;  %v102_v26 = vand.u32 2139095040, %v1033_v24 }
  0x7b   :  { %v103_v28 = vshrl.u32 %v102_v26, 23  ;;  %v106_v29 = vand.u32 8388607, %v99_v25 }
  0x7c   :  { %v52_v30 = vpop.permute.xlu1 %51 }
  0x7d   :  { %v898_v31 = vadd.s32 4294967169, %v103_v28  ;;  %v107_v32 = vor.u32 8388608, %v106_v29  ;;  %v62_v33 = vmul.f32 %v52_v30, %v27_v27 }
  0x7f   :  { %v109_v35 = vadd.s32 1, %v898_v31  ;;  %v1039_v36 = vadd.f32 %v87_v34, %v62_v33  ;;  %v1041_v37 = vshll.u32 %v107_v32, 8  ;;  %v61_v32 = vmul.f32 %v1031_v21, %v26_v42 }
  0x81   :  { %vm110_vm3 = vcmp.gt.s32.totalorder %v109_v35, 0  ;;  %v564_v39 = vand.u32 2147483647, %v1039_v36  ;;  %v567_v40 = vand.u32 2139095040, %v1039_v36  ;;  %v148_v44 = vand.u32 65535, %v1041_v37 }
  0x82   :  { %v111_v38 = vsel %vm110_vm3, %v109_v35, 0  ;;  %v149_v45 = vshrl.u32 %v1041_v37, 16 }
  0x83   :  { %v113_v41 = vand.u32 31, %v111_v38  ;;  %v568_v46 = vshrl.u32 %v567_v40, 23  ;;  %v112_v47 = vshrl.u32 %v111_v38, 5  ;;  %v1052_v52 = vand.u32 8388607, %v564_v39 }
  0x85   :  { %v114_v43 = vsub.s32 32, %v113_v41  ;;  %v116_v49 = vshll.u32 %v953_v48, %v113_v41  ;;  %v119_v51 = vshll.u32 %v954_v50, %v113_v41  ;;  %v122_v56 = vshll.u32 %v955_v54, %v113_v41 }
  0x86   :  { %v125_v59 = vshll.u32 %v956_v57, %v113_v41  ;;  %v128_v62 = vshll.u32 %v957_v60, %v113_v41  ;;  %v907_v5 = vadd.s32 4294967169, %v568_v46  ;;  %vm131_vm4 = vcmp.lt.s32.totalorder %v112_v47, 1 }
  0x87   :  { %v117_v53 = vshrl.u32 %v954_v50, %v114_v43  ;;  %v120_v55 = vshrl.u32 %v955_v54, %v114_v43  ;;  %v123_v58 = vshrl.u32 %v956_v57, %v114_v43  ;;  %v126_v61 = vshrl.u32 %v957_v60, %v114_v43 }
  0x88   :  { %v129_v0 = vshrl.u32 %v958_v63, %v114_v43  ;;  %vm134_vm5 = vcmp.lt.s32.totalorder %v112_v47, 4  ;;  %v115_v8 = vshrl.u32 %v953_v48, %v114_v43  ;;  %vm133_vm6 = vcmp.lt.s32.totalorder %v112_v47, 3 }
  0x89   :  { %v118_v1 = vor.u32 %v117_v53, %v116_v49  ;;  %v121_v3 = vor.u32 %v120_v55, %v119_v51  ;;  %v124_v4 = vor.u32 %v123_v58, %v122_v56  ;;  %v127_v6 = vor.u32 %v126_v61, %v125_v59 }
  0x8a   :  { %v130_v7 = vor.u32 %v129_v0, %v128_v62  ;;  %v574_v17 = vadd.s32 1, %v907_v5  ;;  %vm132_vm7 = vcmp.lt.s32.totalorder %v112_v47, 2  ;;  %v572_v33 = vor.u32 8388608, %v1052_v52 }
  0x8b   :  { %v136_v9 = vsel %vm134_vm5, %v124_v4, 2102212464  ;;  %v139_v10 = vsel %vm131_vm4, %v118_v1, %v121_v3  ;;  %v143_v12 = vsel %vm131_vm4, %v121_v3, %v124_v4  ;;  %v140_v14 = vsel %vm134_vm5, %v127_v6, 920167782 }
  0x8c   :  { %v144_v15 = vsel %vm134_vm5, %v130_v7, 1326507024  ;;  %v135_v19 = vsel %vm131_vm4, %v115_v8, %v118_v1  ;;  %v141_v20 = vsel %vm133_vm6, %v124_v4, %v140_v14  ;;  %v137_v23 = vsel %vm133_vm6, %v121_v3, %v136_v9 }
  0x8d   :  { %v145_v22 = vsel %vm133_vm6, %v127_v6, %v144_v15  ;;  %v142_v26 = vsel %vm132_vm7, %v139_v10, %v141_v20  ;;  %vm575_vm8 = vcmp.gt.s32.totalorder %v574_v17, 0  ;;  %v1065_v34 = vsel %vm132_vm7, %v135_v19, %v137_v23 }
  0x8e   :  { %v146_v27 = vsel %vm132_vm7, %v143_v12, %v145_v22  ;;  %v172_v30 = vand.u32 65535, %v142_v26  ;;  %v173_v31 = vshrl.u32 %v142_v26, 16  ;;  %v576_v40 = vsel %vm575_vm8, %v574_v17, 0  ;;  %v82_v26 = vpop.permute.xlu1 %81 }
  0x8f   :  { %v150_v28 = vand.u32 65535, %v146_v27  ;;  %v151_v29 = vshrl.u32 %v146_v27, 16  ;;  %v578_v52 = vand.u32 31, %v576_v40  ;;  %v1070_v6 = vshrl.u32 %v576_v40, 5 }
  0x90   :  { %v175_v46 = vmul.u32 %v173_v31, %v148_v44  ;;  %v176_v47 = vmul.u32 %v172_v30, %v149_v45  ;;  %v174_v53 = vmul.u32 %v172_v30, %v148_v44  ;;  %v177_v55 = vmul.u32 %v173_v31, %v149_v45 }
  0x91   :  { %v153_v35 = vmul.u32 %v151_v29, %v148_v44  ;;  %v154_v38 = vmul.u32 %v150_v28, %v149_v45  ;;  %v152_v41 = vmul.u32 %v150_v28, %v148_v44  ;;  %v155_v43 = vmul.u32 %v151_v29, %v149_v45 }
  0x92   :  { %v178_v59 = vshll.u32 %v175_v46, 16  ;;  %v179_v61 = vshrl.u32 %v175_v46, 16  ;;  %v180_v42 = vshll.u32 %v176_v47, 16  ;;  %v181_v0 = vshrl.u32 %v176_v47, 16 }
  0x93   :  { %v156_v49 = vshll.u32 %v153_v35, 16  ;;  %v157_v51 = vshrl.u32 %v153_v35, 16  ;;  %v158_v56 = vshll.u32 %v154_v38, 16  ;;  %v159_v58 = vshrl.u32 %v154_v38, 16 }
  0x94   :  { %vm182_vm10 = vc.u32 %v174_v53, %v178_v59  ;;  %v184_v1 = vadd.s32 %v178_v59, %v174_v53  ;;  %v579_v5 = vsub.s32 32, %v578_v52  ;;  %v581_v10 = vshll.u32 %v953_v48, %v578_v52 }
  0x95   :  { %vm160_vm9 = vc.u32 %v152_v41, %v156_v49  ;;  %v162_v21 = vadd.s32 %v156_v49, %v152_v41  ;;  %v183_v4 = vsel %vm182_vm10, 1, %v952_v2  ;;  %v584_v15 = vshll.u32 %v954_v50, %v578_v52 }
  0x96   :  { %v161_v62 = vsel %vm160_vm9, 1, %v952_v2  ;;  %v185_v45 = vadd.s32 %v183_v4, %v177_v55  ;;  %vm186_vm12 = vc.u32 %v184_v1, %v180_v42  ;;  %v1073_v9 = vadd.s32 %v184_v1, %v180_v42 }
  0x97   :  { %v163_v3 = vadd.s32 %v161_v62, %v155_v43  ;;  %vm164_vm11 = vc.u32 %v162_v21, %v158_v56  ;;  %v187_v8 = vsel %vm186_vm12, 1, %v952_v2  ;;  %v582_v14 = vshrl.u32 %v954_v50, %v579_v5 }
  0x98   :  { %v165_v44 = vsel %vm164_vm11, 1, %v952_v2  ;;  %v189_v12 = vadd.s32 %v187_v8, %v185_v45  ;;  %v585_v17 = vshrl.u32 %v955_v54, %v579_v5  ;;  %v587_v20 = vshll.u32 %v955_v54, %v578_v52 }
  0x99   :  { %v167_v7 = vadd.s32 %v165_v44, %v163_v3  ;;  %v588_v22 = vshrl.u32 %v956_v57, %v579_v5  ;;  %v590_v23 = vshll.u32 %v956_v57, %v578_v52  ;;  %v1082_v28 = vor.u32 %v582_v14, %v581_v10 }
  0x9a   :  { %v190_v27 = vadd.s32 %v189_v12, %v179_v61  ;;  %v1084_v29 = vor.u32 %v585_v17, %v584_v15  ;;  %v591_v30 = vshrl.u32 %v957_v60, %v579_v5  ;;  %v593_v38 = vshll.u32 %v957_v60, %v578_v52 }
  0x9b   :  { %v168_v19 = vadd.s32 %v167_v7, %v157_v51  ;;  %v589_v35 = vor.u32 %v588_v22, %v587_v20  ;;  %v594_v40 = vshrl.u32 %v958_v63, %v579_v5  ;;  %v1091_v46 = vadd.f32 %v82_v26, %v61_v32 }
  0x9c   :  { %v191_v41 = vadd.s32 %v190_v27, %v181_v0  ;;  %v592_v43 = vor.u32 %v591_v30, %v590_v23  ;;  %vm596_vm14 = vcmp.lt.s32.totalorder %v1070_v6, 1  ;;  %v1096_v49 = vshll.u32 %v572_v33, 8 }
  0x9d   :  { %v1087_v31 = vadd.s32 %v168_v19, %v159_v58  ;;  %v595_v47 = vor.u32 %v594_v40, %v593_v38  ;;  %v192_v51 = vmul.u32 %v1041_v37, %v1065_v34  ;;  %vm599_vm15 = vcmp.lt.s32.totalorder %v1070_v6, 4 }
  0x9e   :  { %v195_v53 = vadd.s32 1, %v191_v41  ;;  %v604_v32 = vsel %vm596_vm14, %v1082_v28, %v1084_v29  ;;  %vm598_vm0 = vcmp.lt.s32.totalorder %v1070_v6, 3  ;;  %v605_v55 = vsel %vm599_vm15, %v592_v43, 920167782 }
  0x9f   :  { %vm194_vm13 = vc.u32 %v1087_v31, %v1073_v9  ;;  %v608_v33 = vsel %vm596_vm14, %v1084_v29, %v589_v35  ;;  %v609_v37 = vsel %vm599_vm15, %v595_v47, 1326507024  ;;  %vm597_vm1 = vcmp.lt.s32.totalorder %v1070_v6, 2 }
  0xa0   :  { %v196_v34 = vsel %vm194_vm13, %v195_v53, %v191_v41  ;;  %v606_v56 = vsel %vm598_vm0, %v589_v35, %v605_v55  ;;  %v610_v58 = vsel %vm598_vm0, %v592_v43, %v609_v37  ;;  %v613_v42 = vand.u32 65535, %v1096_v49 }
  0xa1   :  { %v197_v59 = vadd.s32 %v196_v34, %v192_v51  ;;  %v607_v61 = vsel %vm597_vm1, %v604_v32, %v606_v56  ;;  %v611_v21 = vsel %vm597_vm1, %v608_v33, %v610_v58  ;;  %v614_v52 = vshrl.u32 %v1096_v49, 16 }
  0xa2   :  { %v615_v62 = vand.u32 65535, %v611_v21  ;;  %v616_v0 = vshrl.u32 %v611_v21, 16  ;;  %v638_v1 = vshrl.u32 %v607_v61, 16  ;;  %v637_v4 = vand.u32 65535, %v607_v61 }
  0xa3   :  { %v198_v3 = vadd.s32 536870912, %v197_v59  ;;  %v580_v10 = vshrl.u32 %v953_v48, %v579_v5  ;;  %v412_v15 = vand.u32 2139095040, %v1091_v46  ;;  %v601_v38 = vsel %vm599_vm15, %v589_v35, 2102212464 }
  0xa4   :  { %v618_v44 = vmul.u32 %v616_v0, %v613_v42  ;;  %v619_v45 = vmul.u32 %v615_v62, %v614_v52  ;;  %v640_v8 = vmul.u32 %v638_v1, %v613_v42  ;;  %v617_v12 = vmul.u32 %v615_v62, %v613_v42 }
  0xa5   :  { %v199_v7 = vshrl.u32 %v198_v3, 30  ;;  %v620_v19 = vmul.u32 %v616_v0, %v614_v52  ;;  %v641_v20 = vmul.u32 %v637_v4, %v614_v52  ;;  %v639_v27 = vmul.u32 %v637_v4, %v613_v42 }
  0xa6   :  { %v621_v14 = vshll.u32 %v618_v44, 16  ;;  %v643_v22 = vshll.u32 %v640_v8, 16  ;;  %v623_v23 = vshll.u32 %v619_v45, 16  ;;  %v622_v40 = vshrl.u32 %v618_v44, 16 }
  0xa7   :  { %v200_v17 = vshll.u32 %v199_v7, 30  ;;  %v642_v43 = vmul.u32 %v638_v1, %v614_v52  ;;  %v645_v53 = vshll.u32 %v641_v20, 16  ;;  %v413_v37 = vshrl.u32 %v412_v15, 23 }
  0xa8   :  { %vm625_vm2 = vc.u32 %v617_v12, %v621_v14  ;;  %v627_v26 = vadd.s32 %v621_v14, %v617_v12  ;;  %vm647_vm4 = vc.u32 %v639_v27, %v643_v22  ;;  %v649_v33 = vadd.s32 %v643_v22, %v639_v27 }
  0xa9   :  { %v201_v30 = vsub.s32 %v197_v59, %v200_v17  ;;  %v626_v41 = vsel %vm625_vm2, 1, %v952_v2  ;;  %v648_v55 = vsel %vm647_vm4, 1, %v952_v2  ;;  %v600_v58 = vsel %vm596_vm14, %v580_v10, %v1082_v28 }
  0xaa   :  { %v628_v5 = vadd.s32 %v626_v41, %v620_v19  ;;  %vm629_vm3 = vc.u32 %v627_v26, %v623_v23  ;;  %v650_v56 = vadd.s32 %v648_v55, %v642_v43  ;;  %vm651_vm6 = vc.u32 %v649_v33, %v645_v53  ;;  %v42_v23 = vpop.permute.xlu0 %41 }
  0xab   :  { %vm202_vm5 = vcmp.lt.s32.totalorder %v201_v30, 0  ;;  %v203_v47 = vsub.s32 0, %v201_v30  ;;  %v630_v51 = vsel %vm629_vm3, 1, %v952_v2  ;;  %v223_v61 = vsub.s32 4, %v199_v7 }
  0xac   :  { %v632_v32 = vadd.s32 %v630_v51, %v628_v5  ;;  %v602_v21 = vsel %vm598_vm0, %v1084_v29, %v601_v38  ;;  %v624_v42 = vshrl.u32 %v619_v45, 16  ;;  %v652_v52 = vsel %vm651_vm6, 1, %v952_v2 }
  0xad   :  { %v204_v34 = vsel %vm202_vm5, %v203_v47, %v201_v30  ;;  %v644_v0 = vshrl.u32 %v640_v8, 16  ;;  %v654_v1 = vadd.s32 %v652_v52, %v650_v56  ;;  %v904_v3 = vadd.s32 4294967169, %v413_v37 }
  0xae   :  { %v205_v35 = vclz %v204_v34  ;;  %v633_v59 = vadd.s32 %v632_v32, %v622_v40  ;;  %vm1140_vm7 = vcmp.le.f32.partialorder %v99_v25, 0.7853982  ;;  %vm101_vm8 = vcmp.lt.s32.totalorder %v1033_v24, 0 }
  0xaf   :  { %v409_v44 = vand.u32 2147483647, %v1091_v46  ;;  %v193_v29 = vadd.s32 %v1073_v9, %v1087_v31  ;;  %v646_v45 = vshrl.u32 %v641_v20, 16  ;;  %v655_v8 = vadd.s32 %v654_v1, %v644_v0 }
  0xb0   :  { %v899_v62 = vadd.s32 4294967294, %v205_v35  ;;  %v1145_v28 = vadd.s32 %v633_v59, %v624_v42  ;;  %v603_v12 = vsel %vm597_vm1, %v600_v58, %v602_v21  ;;  %v1152_v25 = vadd.s32 %v649_v33, %v645_v53 }
  0xb1   :  { %v419_v14 = vadd.s32 1, %v904_v3  ;;  %v224_v19 = vsel %vm101_vm8, %v223_v61, %v199_v7  ;;  %v656_v22 = vadd.s32 %v655_v8, %v646_v45  ;;  %v416_v9 = vand.u32 8388607, %v409_v44 }
  0xb2   :  { %vm900_vm9 = vcmp.lt.s32.totalorder %v899_v62, 0  ;;  %vm659_vm10 = vc.u32 %v1145_v28, %v1152_v25  ;;  %v226_v38 = vsel %vm1140_vm7, 0, %v224_v19  ;;  %v657_v40 = vmul.u32 %v1096_v49, %v603_v12  ;;  %v77_v1 = vpop.permute.xlu0 %76 }
  0xb3   :  { %v208_v10 = vsel %vm900_vm9, 0, %v899_v62  ;;  %vm420_vm11 = vcmp.gt.s32.totalorder %v419_v14, 0  ;;  %v660_v20 = vadd.s32 1, %v656_v22  ;;  %vm23_vm12 = vcmask 1046528  }
  0xb4   :  { %v209_v15 = vsub.s32 32, %v208_v10  ;;  %v213_v17 = vsub.s32 4294967266, %v208_v10  ;;  %v210_v26 = vshll.u32 %v201_v30, %v208_v10  ;;  %v421_v27 = vsel %vm420_vm11, %v419_v14, 0 }
  0xb5   :  { %v423_v7 = vand.u32 31, %v421_v27  ;;  %v661_v5 = vsel %vm659_vm10, %v660_v20, %v656_v22  ;;  %v243_v53 = vadd.s32 3, %v226_v38  ;;  %v24_v32 = vsel %vm23_vm12, %v1028_v18, %v1022_v13 }
  0xb6   :  { %v211_v6 = vshrl.u32 %v193_v29, %v209_v15  ;;  %v214_v31 = vadd.s32 127, %v213_v17  ;;  %v662_v43 = vadd.s32 %v661_v5, %v657_v40  ;;  %v417_v55 = vor.u32 8388608, %v416_v9 }
  0xb7   :  { %v1163_v47 = vsub.s32 32, %v423_v7  ;;  %v435_v49 = vshll.u32 %v956_v57, %v423_v7  ;;  %v1178_v13 = vshrl.u32 %v421_v27, 5  ;;  %v426_v18 = vshll.u32 %v953_v48, %v423_v7 }
  0xb8   :  { %v212_v41 = vor.u32 %v211_v6, %v210_v26  ;;  %v215_v30 = vshll.u32 %v214_v31, 23  ;;  %v663_v37 = vadd.s32 536870912, %v662_v43  ;;  %v429_v52 = vshll.u32 %v954_v50, %v423_v7 }
  0xb9   :  { %v427_v34 = vshrl.u32 %v954_v50, %v1163_v47  ;;  %v430_v35 = vshrl.u32 %v955_v54, %v1163_v47  ;;  %v433_v58 = vshrl.u32 %v956_v57, %v1163_v47  ;;  %v436_v59 = vshrl.u32 %v957_v60, %v1163_v47 }
  0xba   :  { %v216_v51 = vor.u32 4788187, %v215_v30  ;;  %v219_v33 = vcvt.s32.f32 %v212_v41  ;;  %v1176_v61 = vshrl.u32 %v663_v37, 30  ;;  %v439_v21 = vshrl.u32 %v958_v63, %v1163_v47 }
  0xbb   :  { %v432_v62 = vshll.u32 %v955_v54, %v423_v7  ;;  %v437_v0 = vor.u32 %v436_v59, %v435_v49  ;;  %v1185_v3 = vand.u32 3, %v243_v53  ;;  %v60_v45 = vmul.f32 %v42_v23, %v24_v32 }
  0xbc   :  { %v217_v56 = vand.u32 2147483647, %v216_v51  ;;  %v665_v29 = vshll.u32 %v1176_v61, 30  ;;  %v438_v8 = vshll.u32 %v957_v60, %v423_v7  ;;  %v1189_v12 = vor.u32 %v427_v34, %v426_v18 }
  0xbd   :  { %v1191_v14 = vor.u32 %v430_v35, %v429_v52  ;;  %v1193_v15 = vor.u32 %v433_v58, %v432_v62  ;;  %vm444_vm13 = vcmp.lt.s32.totalorder %v1178_v13, 4  ;;  %v1198_v22 = vadd.f32 %v77_v1, %v60_v45 }
  0xbe   :  { %v220_v42 = vmul.f32 %v219_v33, %v217_v56  ;;  %v1195_v17 = vsub.s32 %v662_v43, %v665_v29  ;;  %v440_v19 = vor.u32 %v439_v21, %v438_v8  ;;  %vm441_vm14 = vcmp.lt.s32.totalorder %v1178_v13, 1 }
  0xbf   :  { %v450_v23 = vsel %vm444_vm13, %v437_v0, 920167782  ;;  %v1205_v9 = vshll.u32 %v417_v55, 8  ;;  %vm443_vm0 = vcmp.lt.s32.totalorder %v1178_v13, 3  ;;  %v449_v27 = vsel %vm441_vm14, %v1189_v12, %v1191_v14 }
  0xc0   :  { %v221_v10 = vxor.u32 2147483648, %v220_v42  ;;  %vm667_vm15 = vcmp.lt.s32.totalorder %v1195_v17, 0  ;;  %v668_v31 = vsub.s32 0, %v1195_v17  ;;  %v451_v4 = vsel %vm443_vm0, %v1193_v15, %v450_v23 }
  0xc1   :  { %v453_v38 = vsel %vm441_vm14, %v1191_v14, %v1193_v15  ;;  %v658_v40 = vadd.s32 %v1152_v25, %v1145_v28  ;;  %vm442_vm1 = vcmp.lt.s32.totalorder %v1178_v13, 2  ;;  %v454_v41 = vsel %vm444_vm13, %v440_v19, 1326507024 }
  0xc2   :  { %v222_v26 = vsel %vm101_vm8, %v221_v10, %v220_v42  ;;  %v669_v7 = vsel %vm667_vm15, %v668_v31, %v1195_v17  ;;  %v455_v51 = vsel %vm443_vm0, %v437_v0, %v454_v41  ;;  %v1238_v53 = vsel %vm442_vm1, %v449_v27, %v451_v4 }
  0xc3   :  { %v1210_v6 = vsel %vm1140_vm7, %v1033_v24, %v222_v26  ;;  %v670_v43 = vclz %v669_v7  ;;  %v456_v28 = vsel %vm442_vm1, %v453_v38, %v455_v51  ;;  %v458_v25 = vand.u32 65535, %v1205_v9 }
  0xc4   :  { %v227_v20 = vmul.f32 %v1210_v6, %v1210_v6  ;;  %v254_v32 = vand.u32 2147483647, %v1198_v22  ;;  %v460_v34 = vand.u32 65535, %v456_v28  ;;  %vm566_vm2 = vcmp.lt.s32.totalorder %v1039_v36, 0 }
  0xc5   :  { %v908_v37 = vadd.s32 4294967294, %v670_v43  ;;  %v1247_v49 = vshrl.u32 %v953_v48, %v1163_v47  ;;  %v459_v56 = vshrl.u32 %v1205_v9, 16  ;;  %v461_v35 = vshrl.u32 %v456_v28, 16 }
  0xc6   :  { %v228_v30 = vmul.f32 -0.001358992, %v227_v20  ;;  %v235_v5 = vmul.f32 -0.00019511016, %v227_v20  ;;  %v257_v58 = vand.u32 2139095040, %v1198_v22  ;;  %v688_v21 = vsub.s32 4, %v1176_v61 }
  0xc7   :  { %vm909_vm3 = vcmp.lt.s32.totalorder %v908_v37, 0  ;;  %v463_v52 = vmul.u32 %v461_v35, %v458_v25  ;;  %v1252_v62 = vmul.u32 %v460_v34, %v459_v56  ;;  %v482_v0 = vand.u32 65535, %v1238_v53 }
  0xc8   :  { %v229_v55 = vadd.f32 0.041655596, %v228_v30  ;;  %v236_v33 = vadd.f32 0.008332121, %v235_v5  ;;  %v673_v42 = vsel %vm909_vm3, 0, %v908_v37  ;;  %vm249_vm4 = vcmp.eq.s32.totalorder %v1185_v3, 2 }
  0xc9   :  { %v674_v47 = vsub.s32 32, %v673_v42  ;;  %v483_v45 = vshrl.u32 %v1238_v53, 16  ;;  %vm246_vm5 = vcmp.eq.s32.totalorder %v1185_v3, 0  ;;  %v678_v8 = vsub.s32 4294967266, %v673_v42 }
  0xca   :  { %v230_v59 = vmul.f32 %v229_v55, %v227_v20  ;;  %v237_v18 = vmul.f32 %v236_v33, %v227_v20  ;;  %v462_v10 = vmul.u32 %v460_v34, %v458_v25  ;;  %v465_v19 = vmul.u32 %v461_v35, %v459_v56 }
  0xcb   :  { %v466_v26 = vshll.u32 %v463_v52, 16  ;;  %vm245_vm6 = vcmp.lt.s32.totalorder %v1185_v3, 2  ;;  %v675_v27 = vshll.u32 %v1195_v17, %v673_v42  ;;  %v676_v4 = vshrl.u32 %v658_v40, %v674_v47 }
  0xcc   :  { %v231_v1 = vadd.f32 -0.4999988, %v230_v59  ;;  %v238_v29 = vadd.f32 -0.16666654, %v237_v18  ;;  %vm242_vm7 = vweird.f32 %v1033_v24  ;;  %v679_v38 = vadd.s32 127, %v678_v8 }
  0xcd   :  { %v468_v7 = vshll.u32 %v1252_v62, 16  ;;  %vm470_vm8 = vc.u32 %v462_v10, %v466_v26  ;;  %v472_v41 = vadd.s32 %v466_v26, %v462_v10  ;;  %v677_v43 = vor.u32 %v676_v4, %v675_v27 }
  0xce   :  { %v232_v23 = vmul.f32 %v231_v1, %v227_v20  ;;  %v239_v31 = vmul.f32 %v238_v29, %v227_v20  ;;  %v471_v51 = vsel %vm470_vm8, 1, %v952_v2  ;;  %vm1265_vm9 = vcmp.le.f32.partialorder %v564_v39, 0.7853982 }
  0xcf   :  { %v680_v17 = vshll.u32 %v679_v38, 23  ;;  %v473_v40 = vadd.s32 %v471_v51, %v465_v19  ;;  %vm474_vm10 = vc.u32 %v472_v41, %v468_v7  ;;  %v485_v53 = vmul.u32 %v483_v45, %v458_v25 }
  0xd0   :  { %v233_v30 = vadd.f32 1.0, %v232_v23  ;;  %v240_v5 = vadd.f32 1.0, %v239_v31  ;;  %v689_v33 = vsel %vm566_vm2, %v688_v21, %v1176_v61  ;;  %v475_v37 = vsel %vm474_vm10, 1, %v952_v2 }
  0xd1   :  { %v681_v34 = vor.u32 4788187, %v680_v17  ;;  %v467_v35 = vshrl.u32 %v463_v52, 16  ;;  %v477_v59 = vadd.s32 %v475_v37, %v473_v40  ;;  %v486_v39 = vmul.u32 %v482_v0, %v459_v56 }
  0xd2   :  { %v241_v28 = vmul.f32 %v240_v5, %v1210_v6  ;;  %v250_v55 = vxor.u32 2147483648, %v233_v30  ;;  %v684_v42 = vcvt.s32.f32 %v677_v43  ;;  %v484_v1 = vmul.u32 %v482_v0, %v458_v25 }
  0xd3   :  { %v488_v29 = vshll.u32 %v485_v53, 16  ;;  %v682_v8 = vand.u32 2147483647, %v681_v34  ;;  %v487_v6 = vmul.u32 %v483_v45, %v459_v56  ;;  %v490_v10 = vshll.u32 %v486_v39, 16 }
  0xd4   :  { %v247_v18 = vxor.u32 2147483648, %v241_v28  ;;  %v251_v47 = vsel %vm249_vm4, %v250_v55, %v241_v28  ;;  %v258_v21 = vshrl.u32 %v257_v58, 23  ;;  %v478_v23 = vadd.s32 %v477_v59, %v467_v35 }
  0xd5   :  { %vm492_vm11 = vc.u32 %v484_v1, %v488_v29  ;;  %v494_v61 = vadd.s32 %v488_v29, %v484_v1  ;;  %v685_v26 = vmul.f32 %v684_v42, %v682_v8  ;;  %v446_v56 = vsel %vm444_vm13, %v1193_v15, 2102212464 }
  0xd6   :  { %v248_v19 = vsel %vm246_vm5, %v233_v30, %v247_v18  ;;  %v493_v25 = vsel %vm492_vm11, 1, %v952_v2  ;;  %v469_v58 = vshrl.u32 %v1252_v62, 16  ;;  %v901_v27 = vadd.s32 4294967169, %v258_v21 }
  0xd7   :  { %v252_v52 = vsel %vm245_vm6, %v248_v19, %v251_v47  ;;  %v495_v45 = vadd.s32 %v493_v25, %v487_v6  ;;  %vm496_vm12 = vc.u32 %v494_v61, %v490_v10  ;;  %v686_v31 = vxor.u32 2147483648, %v685_v26 }
  0xd8   :  { %v253_v0 = vsel %vm242_vm7, nan, %v252_v52  ;;  %v497_v3 = vsel %vm496_vm12, 1, %v952_v2  ;;  %v691_v4 = vsel %vm1265_vm9, 0, %v689_v33  ;;  %v445_v24 = vsel %vm441_vm14, %v1247_v49, %v1189_v12 }
  0xd9   :  { %874 = vst [vmem:[#allocation2] sm:$0xff] %v253_v0  ;;  %v489_v15 = vshrl.u32 %v485_v53, 16  ;;  %v499_v38 = vadd.s32 %v497_v3, %v495_v45  ;;  %v687_v7 = vsel %vm566_vm2, %v686_v31, %v685_v26  ;;  %v447_v62 = vsel %vm443_vm0, %v1191_v14, %v446_v56 }
  0xda   :  { %879 = vst [vmem:[#allocation2] sm:$0x7] %v1018_v11  ;;  %v1300_v41 = vadd.s32 %v478_v23, %v469_v58  ;;  %v264_v11 = vadd.s32 1, %v901_v27  ;;  %v690_v30 = vsel %vm1265_vm9, %v1039_v36, %v687_v7  ;;  %v491_v5 = vshrl.u32 %v486_v39, 16 }
  0xdb   :  { %v500_v43 = vadd.s32 %v499_v38, %v489_v15  ;;  %v692_v51 = vmul.f32 %v690_v30, %v690_v30  ;;  %v1305_v12 = vadd.s32 %v494_v61, %v490_v10  ;;  %v261_v49 = vand.u32 8388607, %v254_v32 }
  0xdc   :  { %vm265_vm13 = vcmp.gt.s32.totalorder %v264_v11, 0  ;;  %v708_v17 = vadd.s32 3, %v691_v4  ;;  %v448_v14 = vsel %vm442_vm1, %v445_v24, %v447_v62  ;;  %vm707_vm1 = vweird.f32 %v1039_v36  ;;  %v92_v62 = vpop.permute.xlu0 %91 }
  0xdd   :  { %v501_v40 = vadd.s32 %v500_v43, %v491_v5  ;;  %v266_v53 = vsel %vm265_vm13, %v264_v11, 0  ;;  %v693_v28 = vmul.f32 -0.001358992, %v692_v51  ;;  %v700_v55 = vmul.f32 -0.00019511016, %v692_v51 }
  0xde   :  { %vm504_vm14 = vc.u32 %v1300_v41, %v1305_v12  ;;  %v268_v20 = vand.u32 31, %v266_v53  ;;  %v502_v35 = vmul.u32 %v1205_v9, %v448_v14  ;;  %v709_v39 = vand.u32 3, %v708_v17 }
  0xdf   :  { %v505_v33 = vadd.s32 1, %v501_v40  ;;  %v694_v37 = vadd.f32 0.041655596, %v693_v28  ;;  %v701_v34 = vadd.f32 0.008332121, %v700_v55  ;;  %v262_v29 = vor.u32 8388608, %v261_v49 }
  0xe0   :  { %v1314_v59 = vsub.s32 32, %v268_v20  ;;  %v1316_v47 = vshrl.u32 %v266_v53, 5  ;;  %vm711_vm15 = vcmp.eq.s32.totalorder %v709_v39, 0  ;;  %v271_v52 = vshll.u32 %v953_v48, %v268_v20 }
  0xe1   :  { %v506_v18 = vsel %vm504_vm14, %v505_v33, %v501_v40  ;;  %v695_v42 = vmul.f32 %v694_v37, %v692_v51  ;;  %v702_v13 = vmul.f32 %v701_v34, %v692_v51  ;;  %v274_v26 = vshll.u32 %v954_v50, %v268_v20 }
  0xe2   :  { %v507_v1 = vadd.s32 %v506_v18, %v502_v35  ;;  %v272_v8 = vshrl.u32 %v954_v50, %v1314_v59  ;;  %v275_v6 = vshrl.u32 %v955_v54, %v1314_v59  ;;  %v281_v10 = vshrl.u32 %v957_v60, %v1314_v59 }
  0xe3   :  { %v696_v9 = vadd.f32 -0.4999988, %v695_v42  ;;  %v703_v19 = vadd.f32 -0.16666654, %v702_v13  ;;  %v278_v21 = vshrl.u32 %v956_v57, %v1314_v59  ;;  %v277_v23 = vshll.u32 %v955_v54, %v268_v20 }
  0xe4   :  { %v508_v61 = vadd.s32 536870912, %v507_v1  ;;  %v280_v25 = vshll.u32 %v956_v57, %v268_v20  ;;  %vm710_vm0 = vcmp.lt.s32.totalorder %v709_v39, 2  ;;  %v284_v31 = vshrl.u32 %v958_v63, %v1314_v59 }
  0xe5   :  { %v697_v0 = vmul.f32 %v696_v9, %v692_v51  ;;  %v704_v56 = vmul.f32 %v703_v19, %v692_v51  ;;  %v1335_v58 = vor.u32 %v272_v8, %v271_v52  ;;  %v1337_v3 = vor.u32 %v275_v6, %v274_v26 }
  0xe6   :  { %v1330_v45 = vshrl.u32 %v508_v61, 30  ;;  %v282_v27 = vor.u32 %v281_v10, %v280_v25  ;;  %v283_v4 = vshll.u32 %v957_v60, %v268_v20  ;;  %v1341_v7 = vor.u32 %v278_v21, %v277_v23 }
  0xe7   :  { %v698_v24 = vadd.f32 1.0, %v697_v0  ;;  %v705_v15 = vadd.f32 1.0, %v704_v56  ;;  %vm714_vm2 = vcmp.eq.s32.totalorder %v709_v39, 2  ;;  %vm286_vm3 = vcmp.lt.s32.totalorder %v1316_v47, 1 }
  0xe8   :  { %v510_v38 = vshll.u32 %v1330_v45, 30  ;;  %v285_v11 = vor.u32 %v284_v31, %v283_v4  ;;  %v1344_v5 = vshll.u32 %v262_v29, 8  ;;  %vm289_vm4 = vcmp.lt.s32.totalorder %v1316_v47, 4 }
  0xe9   :  { %v706_v43 = vmul.f32 %v705_v15, %v690_v30  ;;  %v715_v51 = vxor.u32 2147483648, %v698_v24  ;;  %vm288_vm5 = vcmp.lt.s32.totalorder %v1316_v47, 3  ;;  %v294_v17 = vsel %vm286_vm3, %v1335_v58, %v1337_v3 }
  0xea   :  { %v511_v49 = vsub.s32 %v507_v1, %v510_v38  ;;  %v295_v14 = vsel %vm289_vm4, %v282_v27, 920167782  ;;  %v1355_v40 = vadd.f32 %v92_v62, %v1025_v16  ;;  %v298_v28 = vsel %vm286_vm3, %v1337_v3, %v1341_v7 }
  0xeb   :  { %v712_v53 = vxor.u32 2147483648, %v706_v43  ;;  %v716_v55 = vsel %vm714_vm2, %v715_v51, %v706_v43  ;;  %vm287_vm7 = vcmp.lt.s32.totalorder %v1316_v47, 2  ;;  %v296_v20 = vsel %vm288_vm5, %v1341_v7, %v295_v14 }
  0xec   :  { %vm512_vm6 = vcmp.lt.s32.totalorder %v511_v49, 0  ;;  %v513_v30 = vsub.s32 0, %v511_v49  ;;  %v299_v16 = vsel %vm289_vm4, %v285_v11, 1326507024  ;;  %v297_v34 = vsel %vm287_vm7, %v294_v17, %v296_v20 }
  0xed   :  { %v713_v33 = vsel %vm711_vm15, %v698_v24, %v712_v53  ;;  %v300_v35 = vsel %vm288_vm5, %v282_v27, %v299_v16  ;;  %v303_v1 = vand.u32 65535, %v1344_v5  ;;  %v304_v8 = vshrl.u32 %v1344_v5, 16 }
  0xee   :  { %v514_v37 = vsel %vm512_vm6, %v513_v30, %v511_v49  ;;  %v717_v18 = vsel %vm710_vm0, %v713_v33, %v716_v55  ;;  %v301_v13 = vsel %vm287_vm7, %v298_v28, %v300_v35  ;;  %v327_v19 = vand.u32 65535, %v297_v34 }
  0xef   :  { %v515_v42 = vclz %v514_v37  ;;  %v718_v29 = vsel %vm707_vm1, nan, %v717_v18  ;;  %v305_v6 = vand.u32 65535, %v301_v13  ;;  %v306_v10 = vshrl.u32 %v301_v13, 16 }
  0xf0   :  { %877 = vst [vmem:[#allocation2 + $0x18] sm:$0xff] %v718_v29  ;;  %v503_v39 = vadd.s32 %v1305_v12, %v1300_v41  ;;  %v722_v52 = vand.u32 2139095040, %v1355_v40  ;;  %v533_v26 = vsub.s32 4, %v1330_v45  ;;  %v270_v36 = vshrl.u32 %v953_v48, %v1314_v59 }
  0xf1   :  { %v905_v9 = vadd.s32 4294967294, %v515_v42  ;;  %v308_v61 = vmul.u32 %v306_v10, %v303_v1  ;;  %v309_v21 = vmul.u32 %v305_v6, %v304_v8  ;;  %v328_v23 = vshrl.u32 %v297_v34, 16 }
  0xf2   :  { %v307_v0 = vmul.u32 %v305_v6, %v303_v1  ;;  %v310_v56 = vmul.u32 %v306_v10, %v304_v8  ;;  %v329_v24 = vmul.u32 %v327_v19, %v303_v1  ;;  %v331_v15 = vmul.u32 %v327_v19, %v304_v8 }
  0xf3   :  { %vm906_vm8 = vcmp.lt.s32.totalorder %v905_v9, 0  ;;  %v311_v31 = vshll.u32 %v308_v61, 16  ;;  %v313_v41 = vshll.u32 %v309_v21, 16  ;;  %v330_v38 = vmul.u32 %v328_v23, %v303_v1 }
  0xf4   :  { %v518_v25 = vsel %vm906_vm8, 0, %v905_v9  ;;  %vm411_vm10 = vcmp.lt.s32.totalorder %v1091_v46, 0  ;;  %v312_v51 = vshrl.u32 %v308_v61, 16  ;;  %v332_v55 = vmul.u32 %v328_v23, %v304_v8 }
  0xf5   :  { %v519_v27 = vsub.s32 32, %v518_v25  ;;  %v523_v4 = vsub.s32 4294967266, %v518_v25  ;;  %vm315_vm9 = vc.u32 %v307_v0, %v311_v31  ;;  %v317_v12 = vadd.s32 %v311_v31, %v307_v0 }
  0xf6   :  { %v520_v62 = vshll.u32 %v511_v49, %v518_v25  ;;  %v316_v59 = vsel %vm315_vm9, 1, %v952_v2  ;;  %v333_v14 = vshll.u32 %v330_v38, 16  ;;  %v335_v16 = vshll.u32 %v331_v15, 16 }
  0xf7   :  { %v521_v11 = vshrl.u32 %v503_v39, %v519_v27  ;;  %v524_v43 = vadd.s32 127, %v523_v4  ;;  %v318_v17 = vadd.s32 %v316_v59, %v310_v56  ;;  %vm319_vm11 = vc.u32 %v317_v12, %v313_v41 }
  0xf8   :  { %v320_v28 = vsel %vm319_vm11, 1, %v952_v2  ;;  %vm337_vm12 = vc.u32 %v329_v24, %v333_v14  ;;  %v339_v33 = vadd.s32 %v333_v14, %v329_v24  ;;  %v291_v49 = vsel %vm289_vm4, %v1341_v7, 2102212464 }
  0xf9   :  { %v522_v53 = vor.u32 %v521_v11, %v520_v62  ;;  %v525_v30 = vshll.u32 %v524_v43, 23  ;;  %v322_v20 = vadd.s32 %v320_v28, %v318_v17  ;;  %v338_v34 = vsel %vm337_vm12, 1, %v952_v2 }
  0xfa   :  { %v723_v35 = vshrl.u32 %v722_v52, 23  ;;  %v314_v18 = vshrl.u32 %v309_v21, 16  ;;  %v340_v13 = vadd.s32 %v338_v34, %v332_v55  ;;  %vm341_vm13 = vc.u32 %v339_v33, %v335_v16 }
  0xfb   :  { %v526_v37 = vor.u32 4788187, %v525_v30  ;;  %v323_v42 = vadd.s32 %v322_v20, %v312_v51  ;;  %v529_v29 = vcvt.s32.f32 %v522_v53  ;;  %v342_v8 = vsel %vm341_vm13, 1, %v952_v2 }
  0xfc   :  { %v910_v6 = vadd.s32 4294967169, %v723_v35  ;;  %v290_v10 = vsel %vm286_vm3, %v270_v36, %v1335_v58  ;;  %v334_v9 = vshrl.u32 %v330_v38, 16  ;;  %v344_v19 = vadd.s32 %v342_v8, %v340_v13 }
  0xfd   :  { %v527_v1 = vand.u32 2147483647, %v526_v37  ;;  %v719_v7 = vand.u32 2147483647, %v1355_v40  ;;  %v292_v61 = vsel %vm288_vm5, %v1337_v3, %v291_v49  ;;  %v1401_v21 = vadd.s32 %v323_v42, %v314_v18 }
  0xfe   :  { %v729_v52 = vadd.s32 1, %v910_v6  ;;  %v534_v23 = vsel %vm411_vm10, %v533_v26, %v1330_v45  ;;  %v336_v25 = vshrl.u32 %v331_v15, 16  ;;  %v345_v0 = vadd.s32 %v344_v19, %v334_v9 }
  0xff   :  { %v530_v39 = vmul.f32 %v529_v29, %v527_v1  ;;  %vm1408_vm14 = vcmp.le.f32.partialorder %v409_v44, 0.7853982  ;;  %v1412_v56 = vadd.s32 %v339_v33, %v335_v16  ;;  %v293_v3 = vsel %vm287_vm7, %v290_v10, %v292_v61 }
 0x100   :  { %vm730_vm15 = vcmp.gt.s32.totalorder %v729_v52, 0  ;;  %v346_v31 = vadd.s32 %v345_v0, %v336_v25  ;;  %v726_v27 = vand.u32 8388607, %v719_v7  ;;  %v536_v44 = vsel %vm1408_vm14, 0, %v534_v23 }
 0x101   :  { %v531_v36 = vxor.u32 2147483648, %v530_v39  ;;  %v731_v45 = vsel %vm730_vm15, %v729_v52, 0  ;;  %vm349_vm0 = vc.u32 %v1401_v21, %v1412_v56  ;;  %v347_v41 = vmul.u32 %v1344_v5, %v293_v3 }
 0x102   :  { %v733_v4 = vand.u32 31, %v731_v45  ;;  %v350_v24 = vadd.s32 1, %v346_v31  ;;  %v553_v38 = vadd.s32 3, %v536_v44  ;;  %v727_v51 = vor.u32 8388608, %v726_v27 }
 0x103   :  { %v532_v26 = vsel %vm411_vm10, %v531_v36, %v530_v39  ;;  %v1430_v17 = vshrl.u32 %v731_v45, 5  ;;  %vm552_vm3 = vweird.f32 %v1091_v46  ;;  %vm256_vm15 = vcmp.lt.s32.totalorder %v1198_v22, 0 }
 0x104   :  { %v535_v47 = vsel %vm1408_vm14, %v1091_v46, %v532_v26  ;;  %v1428_v12 = vsub.s32 32, %v733_v4  ;;  %v351_v62 = vsel %vm349_vm0, %v350_v24, %v346_v31  ;;  %v745_v20 = vshll.u32 %v956_v57, %v733_v4 }
 0x105   :  { %v537_v15 = vmul.f32 %v535_v47, %v535_v47  ;;  %v352_v59 = vadd.s32 %v351_v62, %v347_v41  ;;  %v739_v33 = vshll.u32 %v954_v50, %v733_v4  ;;  %v742_v37 = vshll.u32 %v955_v54, %v733_v4 }
 0x106   :  { %v740_v14 = vshrl.u32 %v955_v54, %v1428_v12  ;;  %v743_v53 = vshrl.u32 %v956_v57, %v1428_v12  ;;  %v746_v30 = vshrl.u32 %v957_v60, %v1428_v12  ;;  %v737_v16 = vshrl.u32 %v954_v50, %v1428_v12 }
 0x107   :  { %v538_v11 = vmul.f32 -0.001358992, %v537_v15  ;;  %v545_v43 = vmul.f32 -0.00019511016, %v537_v15  ;;  %v353_v55 = vadd.s32 536870912, %v352_v59  ;;  %v749_v49 = vshrl.u32 %v958_v63, %v1428_v12 }
 0x108   :  { %v747_v42 = vor.u32 %v746_v30, %v745_v20  ;;  %v736_v13 = vshll.u32 %v953_v48, %v733_v4  ;;  %v1448_v1 = vor.u32 %v740_v14, %v739_v33  ;;  %v1450_v57 = vor.u32 %v743_v53, %v742_v37 }
 0x109   :  { %v539_v5 = vadd.f32 0.041655596, %v538_v11  ;;  %v546_v28 = vadd.f32 0.008332121, %v545_v43  ;;  %v1445_v18 = vshrl.u32 %v353_v55, 30  ;;  %v748_v29 = vshll.u32 %v957_v60, %v733_v4 }
 0x10a   :  { %v1454_v6 = vor.u32 %v737_v16, %v736_v13  ;;  %vm751_vm1 = vcmp.lt.s32.totalorder %v1430_v17, 1  ;;  %vm754_vm2 = vcmp.lt.s32.totalorder %v1430_v17, 4  ;;  %v554_v60 = vand.u32 3, %v553_v38 }
 0x10b   :  { %v540_v34 = vmul.f32 %v539_v5, %v537_v15  ;;  %v547_v35 = vmul.f32 %v546_v28, %v537_v15  ;;  %v355_v54 = vshll.u32 %v1445_v18, 30  ;;  %v750_v63 = vor.u32 %v749_v49, %v748_v29 }
 0x10c   :  { %v760_v39 = vsel %vm754_vm2, %v747_v42, 920167782  ;;  %vm753_vm4 = vcmp.lt.s32.totalorder %v1430_v17, 3  ;;  %v763_v61 = vsel %vm751_vm1, %v1448_v1, %v1450_v57  ;;  %v1466_v52 = vshll.u32 %v727_v51, 8 }
 0x10d   :  { %v541_v8 = vadd.f32 -0.4999988, %v540_v34  ;;  %v548_v50 = vadd.f32 -0.16666654, %v547_v35  ;;  %v356_v19 = vsub.s32 %v352_v59, %v355_v54  ;;  %vm752_vm6 = vcmp.lt.s32.totalorder %v1430_v17, 2 }
 0x10e   :  { %v759_v58 = vsel %vm751_vm1, %v1454_v6, %v1448_v1  ;;  %v761_v36 = vsel %vm753_vm4, %v1450_v57, %v760_v39  ;;  %v764_v3 = vsel %vm754_vm2, %v750_v63, 1326507024  ;;  %v768_v24 = vand.u32 65535, %v1466_v52 }
 0x10f   :  { %v542_v10 = vmul.f32 %v541_v8, %v537_v15  ;;  %v549_v9 = vmul.f32 %v548_v50, %v537_v15  ;;  %vm357_vm5 = vcmp.lt.s32.totalorder %v356_v19, 0  ;;  %v358_v0 = vsub.s32 0, %v356_v19 }
 0x110   :  { %v765_v26 = vsel %vm753_vm4, %v747_v42, %v764_v3  ;;  %v769_v15 = vshrl.u32 %v1466_v52, 16  ;;  %v762_v38 = vsel %vm752_vm6, %v759_v58, %v761_v36  ;;  %vm555_vm7 = vcmp.lt.s32.totalorder %v554_v60, 2 }
 0x111   :  { %v543_v23 = vadd.f32 1.0, %v542_v10  ;;  %v550_v25 = vadd.f32 1.0, %v549_v9  ;;  %v359_v45 = vsel %vm357_vm5, %v358_v0, %v356_v19  ;;  %v766_v4 = vsel %vm752_vm6, %v763_v61, %v765_v26 }
 0x112   :  { %v360_v44 = vclz %v359_v45  ;;  %v770_v62 = vand.u32 65535, %v766_v4  ;;  %v771_v11 = vshrl.u32 %v766_v4, 16  ;;  %vm556_vm8 = vcmp.eq.s32.totalorder %v554_v60, 0 }
 0x113   :  { %v551_v31 = vmul.f32 %v550_v25, %v535_v47  ;;  %v560_v27 = vxor.u32 2147483648, %v543_v23  ;;  %vm559_vm9 = vcmp.eq.s32.totalorder %v554_v60, 2  ;;  %v792_v30 = vand.u32 65535, %v762_v38 }
 0x114   :  { %v902_v47 = vadd.s32 4294967294, %v360_v44  ;;  %v773_v51 = vmul.u32 %v771_v11, %v768_v24  ;;  %v774_v14 = vmul.u32 %v770_v62, %v769_v15  ;;  %v793_v5 = vshrl.u32 %v762_v38, 16 }
 0x115   :  { %v557_v41 = vxor.u32 2147483648, %v551_v31  ;;  %v561_v59 = vsel %vm559_vm9, %v560_v27, %v551_v31  ;;  %v772_v20 = vmul.u32 %v770_v62, %v768_v24  ;;  %v348_v33 = vadd.s32 %v1412_v56, %v1401_v21 }
 0x116   :  { %vm903_vm10 = vcmp.lt.s32.totalorder %v902_v47, 0  ;;  %v776_v16 = vshll.u32 %v773_v51, 16  ;;  %v775_v34 = vmul.u32 %v771_v11, %v769_v15  ;;  %v778_v42 = vshll.u32 %v774_v14, 16 }
 0x117   :  { %v558_v43 = vsel %vm556_vm8, %v543_v23, %v557_v41  ;;  %v363_v55 = vsel %vm903_vm10, 0, %v902_v47  ;;  %v795_v46 = vmul.u32 %v793_v5, %v768_v24  ;;  %v794_v63 = vmul.u32 %v792_v30, %v768_v24 }
 0x118   :  { %v562_v53 = vsel %vm555_vm7, %v558_v43, %v561_v59  ;;  %v364_v37 = vsub.s32 32, %v363_v55  ;;  %v368_v49 = vsub.s32 4294967266, %v363_v55  ;;  %v365_v35 = vshll.u32 %v356_v19, %v363_v55 }
 0x119   :  { %v563_v28 = vsel %vm552_vm3, nan, %v562_v53  ;;  %vm780_vm11 = vc.u32 %v772_v20, %v776_v16  ;;  %v782_v13 = vadd.s32 %v776_v16, %v772_v20  ;;  %v796_v10 = vmul.u32 %v792_v30, %v769_v15 }
 0x11a   :  { %876 = vst [vmem:[#allocation2 + $0x10] sm:$0xff] %v563_v28  ;;  %v366_v29 = vshrl.u32 %v348_v33, %v364_v37  ;;  %v369_v8 = vadd.s32 127, %v368_v49  ;;  %v781_v50 = vsel %vm780_vm11, 1, %v952_v2  ;;  %v798_v56 = vshll.u32 %v795_v46, 16 }
 0x11b   :  { %v783_v54 = vadd.s32 %v781_v50, %v775_v34  ;;  %vm784_vm12 = vc.u32 %v782_v13, %v778_v42  ;;  %v777_v60 = vshrl.u32 %v773_v51, 16  ;;  %v797_v19 = vmul.u32 %v793_v5, %v769_v15 }
 0x11c   :  { %v367_v9 = vor.u32 %v366_v29, %v365_v35  ;;  %v370_v39 = vshll.u32 %v369_v8, 23  ;;  %v785_v21 = vsel %vm784_vm12, 1, %v952_v2  ;;  %v800_v25 = vshll.u32 %v796_v10, 16 }
 0x11d   :  { %v787_v61 = vadd.s32 %v785_v21, %v783_v54  ;;  %vm802_vm13 = vc.u32 %v794_v63, %v798_v56  ;;  %v804_v0 = vadd.s32 %v798_v56, %v794_v63  ;;  %v756_v58 = vsel %vm754_vm2, %v1450_v57, 2102212464 }
 0x11e   :  { %v371_v23 = vor.u32 4788187, %v370_v39  ;;  %v803_v3 = vsel %vm802_vm13, 1, %v952_v2  ;;  %v374_v27 = vcvt.s32.f32 %v367_v9  ;;  %v735_v26 = vshrl.u32 %v953_v48, %v1428_v12 }
 0x11f   :  { %v788_v36 = vadd.s32 %v787_v61, %v777_v60  ;;  %v805_v45 = vadd.s32 %v803_v3, %v797_v19  ;;  %vm806_vm14 = vc.u32 %v804_v0, %v800_v25  ;;  %v779_v44 = vshrl.u32 %v774_v14, 16 }
 0x120   :  { %v372_v31 = vand.u32 2147483647, %v371_v23  ;;  %v807_v4 = vsel %vm806_vm14, 1, %v952_v2  ;;  %v799_v15 = vshrl.u32 %v795_v46, 16  ;;  %v755_v57 = vsel %vm751_vm1, %v735_v26, %v1454_v6 }
 0x121   :  { %v809_v41 = vadd.s32 %v807_v4, %v805_v45  ;;  %v757_v38 = vsel %vm753_vm4, %v1448_v1, %v756_v58  ;;  %v789_v62 = vadd.s32 %v788_v36, %v779_v44  ;;  %v801_v47 = vshrl.u32 %v796_v10, 16 }
 0x122   :  { %v375_v24 = vmul.f32 %v374_v27, %v372_v31  ;;  %v808_v48 = vadd.s32 %v804_v0, %v800_v25  ;;  %vm1508_vm0 = vcmp.le.f32.partialorder %v254_v32, 0.7853982  ;;  %v758_v6 = vsel %vm752_vm6, %v755_v57, %v757_v38 }
 0x123   :  { %v810_v43 = vadd.s32 %v809_v41, %v799_v15  ;;  %v378_v1 = vsub.s32 4, %v1445_v18  ;;  %v812_v30 = vmul.u32 %v1466_v52, %v758_v6  ;;  %vm397_vm6 = vweird.f32 %v1198_v22 }
 0x124   :  { %v376_v11 = vxor.u32 2147483648, %v375_v24  ;;  %vm814_vm1 = vc.u32 %v789_v62, %v808_v48  ;;  %v813_v36 = vadd.s32 %v808_v48, %v789_v62  ;;  %vm721_vm8 = vcmp.lt.s32.totalorder %v1355_v40, 0 }
 0x125   :  { %v811_v59 = vadd.s32 %v810_v43, %v801_v47  ;;  %v379_v55 = vsel %vm256_vm15, %v378_v1, %v1445_v18  ;;  %vm720_vm9 = vcmp.le.f32.partialorder %v719_v7, 0.7853982  ;;  %vm862_vm13 = vweird.f32 %v1355_v40 }
 0x126   :  { %v377_v12 = vsel %vm256_vm15, %v376_v11, %v375_v24  ;;  %v381_v37 = vsel %vm1508_vm0, 0, %v379_v55 }
 0x127   :  { %v380_v51 = vsel %vm1508_vm0, %v1198_v22, %v377_v12  ;;  %v815_v53 = vadd.s32 1, %v811_v59  ;;  %v398_v29 = vadd.s32 3, %v381_v37 }
 0x128   :  { %v382_v14 = vmul.f32 %v380_v51, %v380_v51 }
 0x129   :  { %v816_v28 = vsel %vm814_vm1, %v815_v53, %v811_v59  ;;  %v399_v18 = vand.u32 3, %v398_v29 }
 0x12a   :  { %v383_v32 = vmul.f32 -0.001358992, %v382_v14  ;;  %v390_v5 = vmul.f32 -0.00019511016, %v382_v14  ;;  %v817_v20 = vadd.s32 %v816_v28, %v812_v30 }
 0x12b   :  { %vm401_vm3 = vcmp.eq.s32.totalorder %v399_v18, 0  ;;  %vm404_vm4 = vcmp.eq.s32.totalorder %v399_v18, 2  ;;  %vm400_vm5 = vcmp.lt.s32.totalorder %v399_v18, 2 }
 0x12c   :  { %v384_v17 = vadd.f32 0.041655596, %v383_v32  ;;  %v391_v16 = vadd.f32 0.008332121, %v390_v5  ;;  %v818_v33 = vadd.s32 536870912, %v817_v20 }
 0x12e   :  { %v385_v49 = vmul.f32 %v384_v17, %v382_v14  ;;  %v392_v34 = vmul.f32 %v391_v16, %v382_v14  ;;  %v819_v35 = vshrl.u32 %v818_v33, 30 }
 0x130   :  { %v386_v42 = vadd.f32 -0.4999988, %v385_v49  ;;  %v393_v13 = vadd.f32 -0.16666654, %v392_v34  ;;  %v820_v8 = vshll.u32 %v819_v35, 30  ;;  %v843_v11 = vsub.s32 4, %v819_v35 }
 0x132   :  { %v387_v52 = vmul.f32 %v386_v42, %v382_v14  ;;  %v394_v50 = vmul.f32 %v393_v13, %v382_v14  ;;  %v821_v46 = vsub.s32 %v817_v20, %v820_v8  ;;  %v844_v2 = vsel %vm721_vm8, %v843_v11, %v819_v35 }
 0x133   :  { %v846_v59 = vsel %vm720_vm9, 0, %v844_v2 }
 0x134   :  { %v388_v54 = vadd.f32 1.0, %v387_v52  ;;  %v395_v63 = vadd.f32 1.0, %v394_v50  ;;  %vm822_vm2 = vcmp.lt.s32.totalorder %v821_v46, 0  ;;  %v823_v10 = vsub.s32 0, %v821_v46 }
 0x135   :  { %v863_v30 = vadd.s32 3, %v846_v59 }
 0x136   :  { %v396_v9 = vmul.f32 %v395_v63, %v380_v51  ;;  %v405_v39 = vxor.u32 2147483648, %v388_v54  ;;  %v824_v21 = vsel %vm822_vm2, %v823_v10, %v821_v46 }
 0x137   :  { %v825_v60 = vclz %v824_v21  ;;  %v864_v55 = vand.u32 3, %v863_v30 }
 0x138   :  { %v402_v56 = vxor.u32 2147483648, %v396_v9  ;;  %v406_v19 = vsel %vm404_vm4, %v405_v39, %v396_v9 }
 0x139   :  { %v911_v23 = vadd.s32 4294967294, %v825_v60  ;;  %vm866_vm10 = vcmp.eq.s32.totalorder %v864_v55, 0  ;;  %vm869_vm11 = vcmp.eq.s32.totalorder %v864_v55, 2  ;;  %vm865_vm12 = vcmp.lt.s32.totalorder %v864_v55, 2 }
 0x13a   :  { %v403_v61 = vsel %vm401_vm3, %v388_v54, %v402_v56 }
 0x13b   :  { %v407_v25 = vsel %vm400_vm5, %v403_v61, %v406_v19  ;;  %vm912_vm7 = vcmp.lt.s32.totalorder %v911_v23, 0 }
 0x13c   :  { %v408_v0 = vsel %vm397_vm6, nan, %v407_v25  ;;  %v828_v58 = vsel %vm912_vm7, 0, %v911_v23 }
 0x13d   :  { %875 = vst [vmem:[#allocation2 + $0x8] sm:$0xff] %v408_v0  ;;  %v829_v3 = vsub.s32 32, %v828_v58  ;;  %v833_v31 = vsub.s32 4294967266, %v828_v58  ;;  %v830_v27 = vshll.u32 %v821_v46, %v828_v58 }
 0x13f   :  { %v831_v45 = vshrl.u32 %v813_v36, %v829_v3  ;;  %v834_v26 = vadd.s32 127, %v833_v31 }
 0x141   :  { %v832_v44 = vor.u32 %v831_v45, %v830_v27  ;;  %v835_v4 = vshll.u32 %v834_v26, 23 }
 0x143   :  { %v836_v24 = vor.u32 4788187, %v835_v4  ;;  %v839_v41 = vcvt.s32.f32 %v832_v44 }
 0x145   :  { %v837_v15 = vand.u32 2147483647, %v836_v24 }
 0x147   :  { %v840_v57 = vmul.f32 %v839_v41, %v837_v15 }
 0x149   :  { %v841_v38 = vxor.u32 2147483648, %v840_v57 }
 0x14b   :  { %v842_v22 = vsel %vm721_vm8, %v841_v38, %v840_v57 }
 0x14c   :  { %v845_v62 = vsel %vm720_vm9, %v1355_v40, %v842_v22 }
 0x14d   :  { %v847_v47 = vmul.f32 %v845_v62, %v845_v62 }
 0x14f   :  { %v848_v43 = vmul.f32 -0.001358992, %v847_v47  ;;  %v855_v48 = vmul.f32 -0.00019511016, %v847_v47 }
 0x151   :  { %v849_v12 = vadd.f32 0.041655596, %v848_v43  ;;  %v856_v6 = vadd.f32 0.008332121, %v855_v48 }
 0x153   :  { %v850_v1 = vmul.f32 %v849_v12, %v847_v47  ;;  %v857_v51 = vmul.f32 %v856_v6, %v847_v47 }
 0x155   :  { %v851_v14 = vadd.f32 -0.4999988, %v850_v1  ;;  %v858_v53 = vadd.f32 -0.16666654, %v857_v51 }
 0x157   :  { %v852_v32 = vmul.f32 %v851_v14, %v847_v47  ;;  %v859_v5 = vmul.f32 %v858_v53, %v847_v47 }
 0x159   :  { %v853_v28 = vadd.f32 1.0, %v852_v32  ;;  %v860_v7 = vadd.f32 1.0, %v859_v5 }
 0x15b   :  { %v861_v20 = vmul.f32 %v860_v7, %v845_v62  ;;  %v870_v17 = vxor.u32 2147483648, %v853_v28 }
 0x15d   :  { %v867_v16 = vxor.u32 2147483648, %v861_v20  ;;  %v871_v37 = vsel %vm869_vm11, %v870_v17, %v861_v20 }
 0x15f   :  { %v868_v33 = vsel %vm866_vm10, %v853_v28, %v867_v16 }
 0x160   :  { %v872_v49 = vsel %vm865_vm12, %v868_v33, %v871_v37 }
 0x161   :  { %v873_v34 = vsel %vm862_vm13, nan, %v872_v49 }
 0x162   :  { %878 = vst [vmem:[#allocation2 + $0x20] sm:$0x7f] %v873_v34 }
 0x163   :  { %892 = dma.vmem_to_hbm [thread:$0]  %s885_s2, 640, %s887_s8, [#allocation3], %s960_s9, %s960_s9, %s961_s10  }
 0x164   :  { %950 = dma.done.wait [#allocation3], 640  }
 0x165   :  { %951 = vsyncadd [#allocation3], 4294966656 }
 0x166   :  { %897 = vsyncpa [#allocation3], 1 }

</bundles_post_ra>
